<compile_context>
chip_gen: v7x
topology: tpu7x:2x2x1
jax: 0.10.0
libtpu: 0.0.40
codegen_flags: <defaults>
</compile_context>

<pallas_src>
import functools

import jax
import jax.numpy as jnp
from jax.experimental import pallas as pl
from jax.experimental.pallas import tpu as pltpu


_MIB = 1024 * 1024
# Grid-invariant weights at/above this size get a single pipeline buffer.
_SINGLE_BUFFER_WEIGHT_BYTES = 2 * _MIB


def _round_up(x, m):
    return (x + m - 1) // m * m


def _vmem_capacity_bytes():
    """Per-TensorCore VMEM capacity (v5e/v6e: 128 MiB, v7x: 64 MiB)."""
    try:
        return int(pltpu.get_tpu_info().vmem_capacity_bytes)
    except Exception:
        return 64 * _MIB  # conservative fallback: v7x per-core capacity


# -----------------------------------------------------------------------------
# Pallas kernel: one (TM, K_pad) patch tile @ resident (K_pad, N_pad) weight
# -----------------------------------------------------------------------------
def _patch_embed_kernel(a_ref, w_ref, b_ref, o_ref):
    # a_ref: (TM, K_pad)    flattened-patch tile (bf16 or f32)
    # w_ref: (K_pad, N_pad) projection weight (lane-padded), grid-invariant
    # b_ref: (1, N_pad)     bias (f32, zero-padded), grid-invariant
    # o_ref: (TM, N_pad)    output tile
    acc = jnp.dot(a_ref[...], w_ref[...], preferred_element_type=jnp.float32)
    o_ref[...] = (acc + b_ref[...]).astype(o_ref.dtype)


def _patch_embed_matmul(patches, weight_t, bias, out_dtype, tm_target=None):
    """patches: (M, K), weight_t: (K, N), bias: (1, N) -> (M, N) in out_dtype."""
    M, K = patches.shape
    Kw, N = weight_t.shape
    assert Kw == K

    a_item = patches.dtype.itemsize
    w_item = weight_t.dtype.itemsize
    o_item = jnp.dtype(out_dtype).itemsize
    b_item = bias.dtype.itemsize

    # ---- lane-align the contraction dim only when misaligned ----------------
    K_pad = max(_round_up(K, 128), 128)
    if K_pad != K:
        patches = jnp.pad(patches, ((0, 0), (0, K_pad - K)))
        weight_t = jnp.pad(weight_t, ((0, K_pad - K), (0, 0)))

    # ---- lane-dense output: pad N (embed_dim) only when misaligned ----------
    N_pad = max(_round_up(N, 128), 128)
    if N_pad != N:
        weight_t = jnp.pad(weight_t, ((0, 0), (0, N_pad - N)))
        bias = jnp.pad(bias, ((0, 0), (0, N_pad - N)))

    # ---- generation-aware VMEM budget ----------------------------------------
    vmem_cap = _vmem_capacity_bytes()
    budget = max(vmem_cap - 16 * _MIB, 32 * _MIB)  # headroom for compiler scratch

    weight_bytes = K_pad * N_pad * w_item
    single_buffer_w = weight_bytes >= _SINGLE_BUFFER_WEIGHT_BYTES
    w_bufs = 1 if single_buffer_w else 2
    fixed_bytes = w_bufs * (weight_bytes + N_pad * b_item)
    per_row_bytes = 2 * (K_pad * a_item + N_pad * o_item)  # dbl-buffered A + out

    # ---- tile M: even split, >= 2 grid steps so both v7x cores get work ------
    if tm_target is None:
        tm_target = 1024 if vmem_cap >= 96 * _MIB else 512
    num_tiles = max(1, pl.cdiv(M, tm_target))
    if num_tiles < 2 and M >= 16:
        num_tiles = 2
    TM = _round_up(pl.cdiv(M, num_tiles), 8)
    tm_budget = max(8, ((budget - fixed_bytes) // max(per_row_bytes, 1)) // 8 * 8)
    TM = int(min(TM, tm_budget))
    M_pad = _round_up(M, TM)
    if M_pad != M:
        patches = jnp.pad(patches, ((0, M_pad - M), (0, 0)))

    grid = (M_pad // TM,)

    cost = pl.CostEstimate(
        flops=2 * M_pad * K_pad * N_pad,
        transcendentals=0,
        bytes_accessed=int(M_pad * K_pad * a_item
                           + K_pad * N_pad * w_item
                           + N_pad * b_item
                           + M_pad * N_pad * o_item),
    )

    vmem_est = fixed_bytes + TM * per_row_bytes
    compiler_params = pltpu.CompilerParams(
        dimension_semantics=("parallel",),
        # Let XLA fold the patch-extraction transpose / bf16 cast into the
        # A-operand feed instead of materializing it separately in HBM.
        allow_input_fusion=[True, False, False],
        vmem_limit_bytes=int(min(max(vmem_est + 4 * _MIB, 32 * _MIB), budget)),
    )

    w_spec_kwargs = {}
    b_spec_kwargs = {}
    if single_buffer_w:
        # Grid-invariant operands never need a second pipeline buffer; halves
        # the weight's VMEM footprint for real ViT configs (biggest win on v7x).
        w_spec_kwargs["pipeline_mode"] = pl.Buffered(1)
        b_spec_kwargs["pipeline_mode"] = pl.Buffered(1)

    out = pl.pallas_call(
        _patch_embed_kernel,
        out_shape=jax.ShapeDtypeStruct((M_pad, N_pad), out_dtype),
        grid=grid,
        in_specs=[
            pl.BlockSpec((TM, K_pad), lambda i: (i, 0)),            # A over M
            pl.BlockSpec((K_pad, N_pad), lambda i: (0, 0), **w_spec_kwargs),
            pl.BlockSpec((1, N_pad), lambda i: (0, 0), **b_spec_kwargs),
        ],
        out_specs=pl.BlockSpec((TM, N_pad), lambda i: (i, 0)),
        compiler_params=compiler_params,
        cost_estimate=cost,
    )(patches, weight_t, bias)

    if M_pad != M or N_pad != N:
        out = out[:M, :N]
    return out


# -----------------------------------------------------------------------------
# Jitted forward: patch extraction (layout plumbing) + Pallas GEMM
# -----------------------------------------------------------------------------
@functools.partial(
    jax.jit,
    static_argnames=("patch_size", "grid_size", "embed_dim",
                     "compute_dtype", "out_dtype", "tm_target"))
def _patch_embed_forward(x, weight, bias, *, patch_size, grid_size, embed_dim,
                         compute_dtype, out_dtype, tm_target):
    TB, C, H, W = x.shape
    ph, pw = patch_size
    gh, gw = grid_size

    # Non-overlapping patches, flattened in (C, kh, kw) order to match the
    # Conv2d weight reshape.  Kept in JAX (pure layout plumbing); the bf16
    # cast fuses with it and allow_input_fusion lets XLA feed it straight
    # into the pallas_call.
    patches = x.reshape(TB, C, gh, ph, gw, pw)
    patches = jnp.transpose(patches, (0, 2, 4, 1, 3, 5))
    patches = patches.reshape(TB * gh * gw, C * ph * pw)

    # Conv weight (E, C, ph, pw) -> (K, N) matmul weight; bias -> (1, N) f32.
    weight_t = weight.reshape(embed_dim, C * ph * pw).T
    bias_2d = bias.reshape(1, embed_dim).astype(jnp.float32)

    if compute_dtype is not None and patches.dtype != jnp.dtype(compute_dtype):
        patches = patches.astype(compute_dtype)
    if compute_dtype is not None and weight_t.dtype != jnp.dtype(compute_dtype):
        weight_t = weight_t.astype(compute_dtype)

    out = _patch_embed_matmul(patches, weight_t, bias_2d,
                              out_dtype=out_dtype, tm_target=tm_target)
    # (M, N) -> (TB, num_patches, embed_dim), matching flatten(2).transpose(1,2)
    return out.reshape(TB, gh * gw, embed_dim)


# -----------------------------------------------------------------------------
# PatchEmbed module equivalent (norm_layer=None -> Identity, i.e. no-op)
# -----------------------------------------------------------------------------
class PatchEmbedPallas:
    def __init__(self, img_size=16, patch_size=8, in_c=4, embed_dim=32,
                 key=None, compute_dtype=jnp.bfloat16, out_dtype=None,
                 tm_target=None):
        self.img_size = (img_size, img_size)
        self.patch_size = (patch_size, patch_size)
        self.grid_size = (img_size // patch_size, img_size // patch_size)
        self.num_patches = self.grid_size[0] * self.grid_size[1]
        self.in_c = in_c
        self.embed_dim = embed_dim
        # bf16 MXU feed (f32 accumulation) by default; pass jnp.float32 for
        # exact parity with the PyTorch f32 Conv2d.
        self.compute_dtype = compute_dtype
        self.out_dtype = out_dtype
        self.tm_target = tm_target

        if key is None:
            key = jax.random.PRNGKey(0)
        k_w, k_b = jax.random.split(key)
        fan_in = in_c * patch_size * patch_size
        bound = 1.0 / jnp.sqrt(fan_in)
        # torch Conv2d weight layout: (out_c, in_c, kh, kw)
        self.weight = jax.random.uniform(
            k_w, (embed_dim, in_c, patch_size, patch_size),
            minval=-bound, maxval=bound, dtype=jnp.float32)
        self.bias = jax.random.uniform(
            k_b, (embed_dim,), minval=-bound, maxval=bound, dtype=jnp.float32)

    def __call__(self, x):
        TB, C, H, W = x.shape
        assert H == self.img_size[0] and W == self.img_size[1], (
            f"Input image size ({H}*{W}) doesn't match model "
            f"({self.img_size[0]}*{self.img_size[1]}).")
        out_dtype = self.out_dtype if self.out_dtype is not None else x.dtype
        return _patch_embed_forward(
            x, self.weight, self.bias,
            patch_size=self.patch_size, grid_size=self.grid_size,
            embed_dim=self.embed_dim, compute_dtype=self.compute_dtype,
            out_dtype=out_dtype, tm_target=self.tm_target)


# -----------------------------------------------------------------------------
# Pure-JAX reference (for self-check)
# -----------------------------------------------------------------------------
def _reference(x, weight, bias, patch_size):
    y = jax.lax.conv_general_dilated(
        x, weight, window_strides=(patch_size, patch_size), padding="VALID",
        dimension_numbers=("NCHW", "OIHW", "NCHW"))
    y = y + bias.reshape(1, -1, 1, 1)
    TB, E, gh, gw = y.shape
    return jnp.transpose(y.reshape(TB, E, gh * gw), (0, 2, 1))


if __name__ == "__main__":
    key = jax.random.PRNGKey(0)
    k_x, k_p = jax.random.split(key)

    # Small shapes: batch=2, channels=4, spatial=16, patch=8, embed=32
    TB, C, H, W = 2, 4, 16, 16
    patch, embed = 8, 32

    x = jax.random.normal(k_x, (TB, C, H, W), dtype=jnp.float32)

    # --- f32 compute: exact semantics of the PyTorch module ------------------
    module_f32 = PatchEmbedPallas(img_size=H, patch_size=patch, in_c=C,
                                  embed_dim=embed, key=k_p,
                                  compute_dtype=jnp.float32)
    out_f32 = jax.block_until_ready(module_f32(x))
    ref = _reference(x, module_f32.weight, module_f32.bias, patch)
    assert out_f32.shape == (TB, module_f32.num_patches, embed), out_f32.shape
    assert jnp.allclose(out_f32, ref, atol=1e-4, rtol=1e-4), (
        float(jnp.max(jnp.abs(out_f32 - ref))))

    # --- default fast path: bf16 MXU feed, f32 accumulation -------------------
    module_bf16 = PatchEmbedPallas(img_size=H, patch_size=patch, in_c=C,
                                   embed_dim=embed, key=k_p)
    out_bf16 = jax.block_until_ready(module_bf16(x))
    assert out_bf16.shape == (TB, module_bf16.num_patches, embed)
    assert jnp.allclose(out_bf16.astype(jnp.float32), ref,
                        atol=5e-2, rtol=5e-2), (
        float(jnp.max(jnp.abs(out_bf16.astype(jnp.float32) - ref))))

    print("KERNEL_OK")
</pallas_src>

<mosaic_0001>
module attributes {stable_mosaic.version = 11 : i64} {
  func.func @_patch_embed_kernel(%arg0: i32, %arg1: memref<8x256xf32, #tpu.memory_space<vmem>>, %arg2: memref<256x128xf32, #tpu.memory_space<vmem>>, %arg3: memref<1x128xf32, #tpu.memory_space<vmem>>, %arg4: memref<8x128xf32, #tpu.memory_space<vmem>>) attributes {dimension_semantics = [#tpu.dimension_semantics<parallel>], iteration_bounds = array<i64: 1>, scalar_prefetch = 0 : i64, scratch_operands = 0 : i64, tpu.core_type = #tpu.core_type<tc>, window_params = [{transform_indices = @transform_0, window_bounds = array<i64: 8, 256>}, {pipeline_mode = #tpu.pipeline_mode<synchronous>, transform_indices = @transform_1, window_bounds = array<i64: 256, 128>}, {pipeline_mode = #tpu.pipeline_mode<synchronous>, transform_indices = @transform_2, window_bounds = array<i64: 1, 128>}, {transform_indices = @transform_3, window_bounds = array<i64: 8, 128>}]} {
    %c0 = arith.constant 0 : index
    %c0_0 = arith.constant 0 : index
    %0 = vector.load %arg1[%c0, %c0_0] : memref<8x256xf32, #tpu.memory_space<vmem>>, vector<8x256xf32>
    %c0_1 = arith.constant 0 : index
    %c0_2 = arith.constant 0 : index
    %1 = vector.load %arg2[%c0_1, %c0_2] : memref<256x128xf32, #tpu.memory_space<vmem>>, vector<256x128xf32>
    %cst = arith.constant dense<0.000000e+00> : vector<8x128xf32>
    %2 = tpu.matmul %0, %1, %cst {dimension_numbers = #tpu.dot_dimension_numbers<[1], [0], [0], [1], [0, 0, 1, 1], [], []>} : vector<8x256xf32>, vector<256x128xf32>, vector<8x128xf32> -> vector<8x128xf32>
    %c0_3 = arith.constant 0 : index
    %c0_4 = arith.constant 0 : index
    %3 = vector.load %arg3[%c0_3, %c0_4] : memref<1x128xf32, #tpu.memory_space<vmem>>, vector<1x128xf32>
    %4 = vector.broadcast %3 : vector<1x128xf32> to vector<8x128xf32>
    %5 = arith.addf %2, %4 : vector<8x128xf32>
    %c0_5 = arith.constant 0 : index
    %c0_6 = arith.constant 0 : index
    %6 = vector.load %arg4[%c0_5, %c0_6] : memref<8x128xf32, #tpu.memory_space<vmem>>, vector<8x128xf32>
    tpu.vector_store %arg4[%c0_5, %c0_6], %5 {strides = array<i32>} : memref<8x128xf32, #tpu.memory_space<vmem>>, vector<8x128xf32>,
    return
  }
  func.func @transform_0(%arg0: i32) -> (i32, i32) {
    %c0_i32 = arith.constant 0 : i32
    %c0_i32_0 = arith.constant 0 : i32
    return %arg0, %c0_i32 : i32, i32
  }
  func.func @transform_1(%arg0: i32) -> (i32, i32) {
    %c0_i32 = arith.constant 0 : i32
    %c0_i32_0 = arith.constant 0 : i32
    %c0_i32_1 = arith.constant 0 : i32
    return %c0_i32, %c0_i32_0 : i32, i32
  }
  func.func @transform_2(%arg0: i32) -> (i32, i32) {
    %c0_i32 = arith.constant 0 : i32
    %c0_i32_0 = arith.constant 0 : i32
    %c0_i32_1 = arith.constant 0 : i32
    return %c0_i32, %c0_i32_0 : i32, i32
  }
  func.func @transform_3(%arg0: i32) -> (i32, i32) {
    %c0_i32 = arith.constant 0 : i32
    %c0_i32_0 = arith.constant 0 : i32
    return %arg0, %c0_i32 : i32, i32
  }
}

</mosaic_0001>

<bundles_post_ra>
// kernel: _patch_embed_forward.1
= control target key start
LH: loop header
LB: loop body
LE: loop exit
PB: predicated region body
PF: predicated region fallthrough
CT: control target
= control target key end

     0   :  { %s372_s0 = inlined_call_operand.vmem [shape: f32[8,256], index: 0, kind: input, shape index: {}]   ;;  %s373_s1 = inlined_call_operand.vmem [shape: f32[256,128], index: 1, kind: input, shape index: {}]   ;;  %s374_s2 = inlined_call_operand.vmem [shape: f32[1,128], index: 2, kind: input, shape index: {}]   ;;  %s375_s3 = inlined_call_operand.hbm [shape: f32[8,128], index: 3, kind: output, shape index: {}]  }
   0x1   :  { %v33_v0 = vld [vmem:[%s373_s1 + $0x80] sm:$0xff]  ;;  %v34_v1 = vld [vmem:[%s373_s1 + $0x88] sm:$0xff]  ;;  %v35_v5 = vld [vmem:[%s373_s1 + $0x90] sm:$0xff] }
   0x2   :  { %v17_v2 = vld [vmem:[%s373_s1] sm:$0xff]  ;;  %v177_v3 = vpack.c.bf16 %v34_v1, %v33_v0  ;;  %v18_v4 = vld [vmem:[%s373_s1 + $0x8] sm:$0xff]  ;;  %v36_v6 = vld [vmem:[%s373_s1 + $0x98] sm:$0xff] }
   0x3   :  { %v179_v7 = vpack.c.bf16 %v18_v4, %v17_v2  ;;  %v181_v8 = vpack.c.bf16 %v36_v6, %v35_v5  ;;  %v19_v9 = vld [vmem:[%s373_s1 + $0x10] sm:$0xff]  ;;  %v20_v10 = vld [vmem:[%s373_s1 + $0x18] sm:$0xff]  ;;  %v37_v11 = vld [vmem:[%s373_s1 + $0xa0] sm:$0xff] }
   0x4   :  { %178 = vmatprep.subr.bf16.mxu0 %v177_v3  ;;  %v38_v12 = vld [vmem:[%s373_s1 + $0xa8] sm:$0xff]  ;;  %v183_v13 = vpack.c.bf16 %v20_v10, %v19_v9  ;;  %v21_v15 = vld [vmem:[%s373_s1 + $0x20] sm:$0xff]  ;;  %v39_v17 = vld [vmem:[%s373_s1 + $0xb0] sm:$0xff] }
   0x5   :  { %180 = vmatpush3.bf16.msra.mxu0 %v179_v7  ;;  %v185_v14 = vpack.c.bf16 %v38_v12, %v37_v11  ;;  %v22_v16 = vld [vmem:[%s373_s1 + $0x28] sm:$0xff]  ;;  %v40_v18 = vld [vmem:[%s373_s1 + $0xb8] sm:$0xff]  ;;  %v23_v21 = vld [vmem:[%s373_s1 + $0x30] sm:$0xff] }
   0x6   :  { %182 = vmatprep.subr.bf16.mxu0 %v181_v8  ;;  %v187_v19 = vpack.c.bf16 %v22_v16, %v21_v15  ;;  %v189_v20 = vpack.c.bf16 %v40_v18, %v39_v17  ;;  %v24_v22 = vld [vmem:[%s373_s1 + $0x38] sm:$0xff]  ;;  %v41_v23 = vld [vmem:[%s373_s1 + $0xc0] sm:$0xff]  ;;  %v42_v24 = vld [vmem:[%s373_s1 + $0xc8] sm:$0xff] }
   0x7   :  { %v16_v25 = vld [vmem:[%s372_s0 + $0x8] sm:$0xff] }
   0x8   :  { %120 = vmatprep.mubr.f32.mxu0 %v16_v25 }
   0x9   :  { %184 = vmatpush3.bf16.msra.mxu0 %v183_v13 }
   0xa   :  { %186 = vmatprep.subr.bf16.mxu0 %v185_v14 }
   0xb   :  { %8 = vsyncpa [#allocation3], 0  ;;  %v191_v26 = vpack.c.bf16 %v24_v22, %v23_v21  ;;  %v193_v27 = vpack.c.bf16 %v42_v24, %v41_v23  ;;  %v25_v28 = vld [vmem:[%s373_s1 + $0x40] sm:$0xff]  ;;  %v26_v29 = vld [vmem:[%s373_s1 + $0x48] sm:$0xff]  ;;  %s234_s28 = smov [#allocation2]  }
   0xc   :  { %v43_v30 = vld [vmem:[%s373_s1 + $0xd0] sm:$0xff]  ;;  %v44_v31 = vld [vmem:[%s373_s1 + $0xd8] sm:$0xff]  ;;  %v195_v32 = vpack.c.bf16 %v26_v29, %v25_v28  ;;  %v45_v36 = vld [vmem:[%s373_s1 + $0xe0] sm:$0xff]  ;;  %s133_s29 = sshll.u32 %s234_s28, 4  ;;  %s134_s29 = int_to_ptr.vmem [resolvable:$true] %s133_s29 }
   0xd   :  { %188 = vmatpush3.bf16.msra.mxu0 %v187_v19  ;;  %v197_v33 = vpack.c.bf16 %v44_v31, %v43_v30  ;;  %v27_v34 = vld [vmem:[%s373_s1 + $0x50] sm:$0xff]  ;;  %v28_v35 = vld [vmem:[%s373_s1 + $0x58] sm:$0xff]  ;;  %v46_v37 = vld [vmem:[%s373_s1 + $0xe8] sm:$0xff]  ;;  %p215_p1 = scmp.lt.s32.totalorder %s134_s29, %s134_s29 }
   0xe   :  { %190 = vmatprep.subr.bf16.mxu0 %v189_v20  ;;  %v199_v38 = vpack.c.bf16 %v28_v35, %v27_v34  ;;  %v201_v39 = vpack.c.bf16 %v46_v37, %v45_v36  ;;  %v29_v40 = vld [vmem:[%s373_s1 + $0x60] sm:$0xff]  ;;  %v30_v41 = vld [vmem:[%s373_s1 + $0x68] sm:$0xff]  ;;  %v47_v42 = vld [vmem:[%s373_s1 + $0xf0] sm:$0xff] }
   0xf   :  { %v48_v43 = vld [vmem:[%s373_s1 + $0xf8] sm:$0xff]  ;;  %v203_v44 = vpack.c.bf16 %v30_v41, %v29_v40  ;;  %v31_v46 = vld [vmem:[%s373_s1 + $0x70] sm:$0xff]  ;;  %v15_v49 = vld [vmem:[%s372_s0] sm:$0xff] }
  0x10   :  { %v205_v45 = vpack.c.bf16 %v48_v43, %v47_v42  ;;  %v32_v47 = vld [vmem:[%s373_s1 + $0x78] sm:$0xff]  ;;  %v141_v52 = vld [vmem:[%s374_s2] ss:$0 sm:$0xff]  ;;  %s210_s1 = scalar_lea.vmem %s134_s29, 128 }
  0x11   :  { %192 = vmatpush3.bf16.msra.mxu0 %v191_v26  ;;  %v207_v48 = vpack.c.bf16 %v32_v47, %v31_v46  ;;  %p211_p0 = scmp.ne.s32.totalorder %s134_s29, %s210_s1  ;;  %p216_p2 = scmp.lt.s32.totalorder %s210_s1, %s210_s1 }
  0x12   :  { %194 = vmatprep.subr.bf16.mxu0 %v193_v27 }
  0x13   :  { %p217_p3 = por %p216_p2, %p215_p1 }
  0x15   :  { %196 = vmatpush3.bf16.msra.mxu0 %v195_v32  ;;  %p218_p4 = pnand %p217_p3, %p211_p0 }
  0x16   :  { %198 = vmatprep.subr.bf16.mxu0 %v197_v33 }
  0x19   :  { %200 = vmatpush3.bf16.msra.mxu0 %v199_v38 }
  0x1a   :  { %202 = vmatprep.subr.bf16.mxu0 %v201_v39 }
  0x1d   :  { %204 = vmatpush3.bf16.msra.mxu0 %v203_v44 }
  0x1e   :  { %206 = vmatprep.subr.bf16.mxu0 %v205_v45 }
  0x21   :  { %208 = vmatpush3.bf16.msra.mxu0 %v207_v48 }
  0x24   :  { %121 = vmatmul.mubr.f32.vlgmr.msra.gmra.mrb[0].mxu0 %v15_v49 }
  0xf7   :  { %v174_v50 = vpop.f32.mrb[0].mxu0 }
  0xf8   :  { %v175_v51 = vpop.f32.mrb[1].mxu0 }
  0xf9   :  { %v176_v53 = vadd.f32 %v175_v51, %v174_v50 }
  0xfb   :  { %v123_v54 = vadd.f32 %v176_v53, %v141_v52 }
  0xfd   :  { %126 = vst [vmem:[#allocation2] sm:$0xff] %v123_v54 }
  0xfe   :  { %221 = shalt.err (!%p218_p4)
}
  0xff   :  { %s222_s4 = scalar_lea.hbm %s375_s3, 128 }
 0x100   :  { %p223_p5 = scmp.ne.s32.totalorder %s375_s3, %s222_s4  ;;  %p226_p6 = scmp.lt.u32.totalorder %s222_s4, %s375_s3 }
 0x102   :  { %p228_p7 = pnand %p226_p6, %p223_p5 }
 0x104   :  { %231 = shalt.err (!%p228_p7)
}
 0x105   :  { %136 = dma.vmem_to_hbm [thread:$0]  %s134_s29, 128, %s375_s3, [#allocation3]  }
 0x106   :  { %232 = dma.done.wait [#allocation3], 128  }
 0x107   :  { %233 = vsyncadd [#allocation3], 4294967168 }
 0x108   :  { %140 = vsyncpa [#allocation3], 1 }

</bundles_post_ra>
